<compile_context>
chip_gen: v6e
topology: v6e:2x2x1
jax: 0.10.0
libtpu: 0.0.40
codegen_flags: <defaults>
</compile_context>

<pallas_src>
import functools

import jax
import jax.numpy as jnp
from jax.experimental import pallas as pl
from jax.experimental.pallas import tpu as pltpu


# ----------------------------------------------------------------------------
# Kernels
# ----------------------------------------------------------------------------
def _gn_tpu_kernel(seed_ref, x_ref, o_ref, *, sigma):
    """TPU path: on-chip Gaussian noise via the hardware PRNG."""
    # Mix the grid index into the seed with an odd multiplier so consecutive
    # user seeds don't produce overlapping per-tile streams; each grid step is
    # statistically independent -> safe for "parallel" dimension semantics.
    pltpu.prng_seed(seed_ref[0] * jnp.int32(1000003) + pl.program_id(0))
    noise = pltpu.stateful_normal(x_ref.shape, jnp.float32)   # standard normal
    xv = x_ref[...].astype(jnp.float32)
    o_ref[...] = (xv + noise * (sigma * xv)).astype(o_ref.dtype)


def _gn_portable_kernel(x_ref, n_ref, o_ref, *, sigma):
    """Portable path (interpret / non-TPU): noise supplied as an input."""
    xv = x_ref[...].astype(jnp.float32)
    nv = n_ref[...].astype(jnp.float32)
    o_ref[...] = (xv + nv * (sigma * xv)).astype(o_ref.dtype)


# ----------------------------------------------------------------------------
# Wrapper
# ----------------------------------------------------------------------------
def gaussian_noise(x, seed, *, sigma=0.1, training=True, is_relative_detach=True):
    """JAX/Pallas equivalent of GaussianNoise.forward."""
    del is_relative_detach  # forward value is identical either way
    if (not training) or sigma == 0:
        return x

    orig_shape = x.shape
    orig_dtype = x.dtype
    total = x.size

    LANES = 128
    MAX_TILE_ROWS = 2048  # (2048, 128) f32 = 1 MiB/tile; double-buffered in+out
    #                       stays well under the default scoped VMEM on v5e/v6e/v7x.

    rows = pl.cdiv(total, LANES)
    rows8 = pl.cdiv(rows, 8) * 8                      # (8, 128) granule
    tile_rows = min(MAX_TILE_ROWS, rows8)
    rows_padded = pl.cdiv(rows8, tile_rows) * tile_rows
    padded_total = rows_padded * LANES

    xf = x.reshape(-1)
    if padded_total != total:
        xf = jnp.pad(xf, (0, padded_total - total))
    x2 = xf.reshape(rows_padded, LANES)               # native dtype, no upcast

    grid = (rows_padded // tile_rows,)
    block = pl.BlockSpec((tile_rows, LANES), lambda i: (i, 0))
    sigma_f = float(sigma)

    if jax.default_backend() == "tpu":
        seed_arr = jnp.asarray([seed], dtype=jnp.int32)
        out = pl.pallas_call(
            functools.partial(_gn_tpu_kernel, sigma=sigma_f),
            out_shape=jax.ShapeDtypeStruct((rows_padded, LANES), orig_dtype),
            grid=grid,
            in_specs=[
                pl.BlockSpec(memory_space=pltpu.MemorySpace.SMEM),  # scalar seed
                block,                                              # x tile
            ],
            out_specs=block,
            input_output_aliases={1: 0},  # reuse x2's HBM buffer for the output
            compiler_params=pltpu.CompilerParams(
                dimension_semantics=("parallel",),       # independent tiles
                vmem_limit_bytes=32 * 1024 * 1024,       # headroom on v5e
            ),
        )(seed_arr, x2)
    else:
        # Non-TPU / interpret fallback: pltpu PRNG primitives have no CPU
        # lowering, so draw the standard normal noise with jax.random and fuse
        # the elementwise math in a portable Pallas kernel.
        noise = jax.random.normal(
            jax.random.PRNGKey(seed), (rows_padded, LANES), dtype=jnp.float32
        )
        out = pl.pallas_call(
            functools.partial(_gn_portable_kernel, sigma=sigma_f),
            out_shape=jax.ShapeDtypeStruct((rows_padded, LANES), orig_dtype),
            grid=grid,
            in_specs=[block, block],
            out_specs=block,
        )(x2, noise)

    return out.reshape(-1)[:total].reshape(orig_shape)


# ----------------------------------------------------------------------------
# Demo / sanity checks
# ----------------------------------------------------------------------------
if __name__ == "__main__":
    key = jax.random.PRNGKey(0)
    # NCHW, consistent with a conv-style activation tensor.
    x = jax.random.normal(key, (2, 4, 16, 16), dtype=jnp.float32)

    y = gaussian_noise(x, seed=0, sigma=0.1, training=True, is_relative_detach=True)
    y = jax.block_until_ready(y)

    # Forward-semantics sanity checks.
    assert y.shape == x.shape and y.dtype == x.dtype
    assert bool(jnp.all(jnp.isfinite(y)))
    assert bool(jnp.any(y != x))                      # noise was actually applied

    # Eval mode (and sigma == 0) are identity.
    y_eval = gaussian_noise(x, seed=0, sigma=0.1, training=False)
    assert bool(jnp.all(y_eval == x))
    y_zero = gaussian_noise(x, seed=0, sigma=0.0, training=True)
    assert bool(jnp.all(y_zero == x))

    print("KERNEL_OK")
</pallas_src>

<mosaic_0001>
module attributes {stable_mosaic.version = 11 : i64} {
  func.func @_gn_portable_kernel(%arg0: i32, %arg1: memref<16x128xf32, #tpu.memory_space<vmem>>, %arg2: memref<16x128xf32, #tpu.memory_space<vmem>>, %arg3: memref<16x128xf32, #tpu.memory_space<vmem>>) attributes {dimension_semantics = [#tpu.dimension_semantics<arbitrary>], iteration_bounds = array<i64: 1>, scalar_prefetch = 0 : i64, scratch_operands = 0 : i64, tpu.core_type = #tpu.core_type<tc>, window_params = [{transform_indices = @transform_0, window_bounds = array<i64: 16, 128>}, {transform_indices = @transform_1, window_bounds = array<i64: 16, 128>}, {transform_indices = @transform_2, window_bounds = array<i64: 16, 128>}]} {
    %c0 = arith.constant 0 : index
    %c0_0 = arith.constant 0 : index
    %0 = vector.load %arg1[%c0, %c0_0] : memref<16x128xf32, #tpu.memory_space<vmem>>, vector<16x128xf32>
    %c0_1 = arith.constant 0 : index
    %c0_2 = arith.constant 0 : index
    %1 = vector.load %arg2[%c0_1, %c0_2] : memref<16x128xf32, #tpu.memory_space<vmem>>, vector<16x128xf32>
    %cst = arith.constant 1.000000e-01 : f32
    %2 = vector.broadcast %cst : f32 to vector<16x128xf32>
    %3 = arith.mulf %2, %0 : vector<16x128xf32>
    %4 = arith.mulf %1, %3 : vector<16x128xf32>
    %5 = arith.addf %0, %4 : vector<16x128xf32>
    %c0_3 = arith.constant 0 : index
    %c0_4 = arith.constant 0 : index
    %6 = vector.load %arg3[%c0_3, %c0_4] : memref<16x128xf32, #tpu.memory_space<vmem>>, vector<16x128xf32>
    tpu.vector_store %arg3[%c0_3, %c0_4], %5 {strides = array<i32>} : memref<16x128xf32, #tpu.memory_space<vmem>>, vector<16x128xf32>,
    return
  }
  func.func @transform_0(%arg0: i32) -> (i32, i32) {
    %c0_i32 = arith.constant 0 : i32
    %c0_i32_0 = arith.constant 0 : i32
    return %arg0, %c0_i32 : i32, i32
  }
  func.func @transform_1(%arg0: i32) -> (i32, i32) {
    %c0_i32 = arith.constant 0 : i32
    %c0_i32_0 = arith.constant 0 : i32
    return %arg0, %c0_i32 : i32, i32
  }
  func.func @transform_2(%arg0: i32) -> (i32, i32) {
    %c0_i32 = arith.constant 0 : i32
    %c0_i32_0 = arith.constant 0 : i32
    return %arg0, %c0_i32 : i32, i32
  }
}

</mosaic_0001>

<bundles_post_ra>
// kernel: tpu_custom_call.1
= control target key start
LH: loop header
LB: loop body
LE: loop exit
PB: predicated region body
PF: predicated region fallthrough
CT: control target
= control target key end

     0   :  { %7 = vsyncpa [#allocation3], 0  ;;  %s179_s0 = inlined_call_operand.hbm [shape: f32[16,128], index: 0, kind: input, shape index: {}]   ;;  %s180_s1 = inlined_call_operand.hbm [shape: f32[16,128], index: 1, kind: input, shape index: {}]   ;;  %s181_s2 = inlined_call_operand.hbm [shape: f32[16,128], index: 2, kind: output, shape index: {}]  }
   0x1   :  { %8 = vsyncpa [#allocation6], 0 }
   0x2   :  { %9 = vsyncpa [#allocation4], 0  ;;  %s141_s9 = smov [#allocation2]  }
   0x3   :  { %s15_s10 = sshll.u32 %s141_s9, 4  ;;  %s16_s10 = int_to_ptr.vmem [resolvable:$true] %s15_s10 }
   0x4   :  { %s83_s11 = scalar_lea.vmem %s16_s10, 256  ;;  %p88_p1 = scmp.lt.s32.totalorder %s16_s10, %s16_s10 }
   0x5   :  { %p84_p0 = scmp.ne.s32.totalorder %s16_s10, %s83_s11  ;;  %p89_p2 = scmp.lt.s32.totalorder %s83_s11, %s83_s11 }
   0x7   :  { %p90_p3 = por %p89_p2, %p88_p1 }
   0x9   :  { %p91_p4 = pnand %p90_p3, %p84_p0 }
   0xb   :  { %94 = shalt.err (!%p91_p4)
}
   0xc   :  { %s142_s12 = smov 128   ;;  %s143_s13 = smov 8  }
   0xd   :  { %21 = dma.hbm_to_vmem [thread:$0]  %s179_s0, 256, %s16_s10, [#allocation3], %s142_s12, %s142_s12, %s143_s13  }
   0xe   :  { %s144_s16 = smov [#allocation5]  }
   0xf   :  { %s27_s17 = sshll.u32 %s144_s16, 4  ;;  %s28_s17 = int_to_ptr.vmem [resolvable:$true] %s27_s17 }
  0x10   :  { %s103_s18 = scalar_lea.vmem %s28_s17, 256  ;;  %p108_p6 = scmp.lt.s32.totalorder %s28_s17, %s28_s17 }
  0x11   :  { %p104_p5 = scmp.ne.s32.totalorder %s28_s17, %s103_s18  ;;  %p109_p7 = scmp.lt.s32.totalorder %s103_s18, %s103_s18 }
  0x13   :  { %p110_p8 = por %p109_p7, %p108_p6 }
  0x15   :  { %p111_p9 = pnand %p110_p8, %p104_p5 }
  0x17   :  { %114 = shalt.err (!%p111_p9)
}
  0x18   :  { %33 = dma.hbm_to_vmem [thread:$0]  %s180_s1, 256, %s28_s17, [#allocation6], %s142_s12, %s142_s12, %s143_s13  }
  0x19   :  { %135 = dma.done.wait [#allocation3], 256  }
  0x1a   :  { %136 = vsyncadd [#allocation3], 4294967040 }
  0x1b   :  { %137 = dma.done.wait [#allocation6], 256  }
  0x1c   :  { %138 = vsyncadd [#allocation6], 4294967040  ;;  %v40_v0 = vld [vmem:[#allocation2] sm:$0xff]  ;;  %v42_v1 = vld [vmem:[#allocation5] sm:$0xff]  ;;  %s145_s0 = smov [#allocation7]  }
  0x1d   :  { %v41_v2 = vld [vmem:[#allocation2 + $0x8] sm:$0xff]  ;;  %v44_v3 = vmul.f32 0.1, %v40_v0  ;;  %v43_v4 = vld [vmem:[#allocation5 + $0x8] sm:$0xff]  ;;  %s57_s21 = sshll.u32 %s145_s0, 4  ;;  %s58_s21 = int_to_ptr.vmem [resolvable:$true] %s57_s21 }
  0x1e   :  { %v45_v5 = vmul.f32 0.1, %v41_v2  ;;  %s115_s1 = scalar_lea.vmem %s58_s21, 256  ;;  %p120_p11 = scmp.lt.s32.totalorder %s58_s21, %s58_s21 }
  0x1f   :  { %v46_v6 = vmul.f32 %v44_v3, %v42_v1  ;;  %p116_p10 = scmp.ne.s32.totalorder %s58_s21, %s115_s1  ;;  %p121_p12 = scmp.lt.s32.totalorder %s115_s1, %s115_s1 }
  0x20   :  { %v47_v7 = vmul.f32 %v45_v5, %v43_v4 }
  0x21   :  { %v48_v8 = vadd.f32 %v46_v6, %v40_v0  ;;  %p122_p13 = por %p121_p12, %p120_p11 }
  0x22   :  { %v49_v9 = vadd.f32 %v47_v7, %v41_v2 }
  0x23   :  { %50 = vst [vmem:[#allocation7] sm:$0xff] %v48_v8  ;;  %p123_p0 = pnand %p122_p13, %p116_p10 }
  0x24   :  { %51 = vst [vmem:[#allocation7 + $0x8] sm:$0xff] %v49_v9 }
  0x25   :  { %126 = shalt.err (!%p123_p0)
}
  0x26   :  { %63 = dma.vmem_to_hbm [thread:$0]  %s58_s21, 256, %s181_s2, [#allocation4], %s142_s12, %s142_s12, %s143_s13  }
  0x27   :  { %139 = dma.done.wait [#allocation4], 256  }
  0x28   :  { %140 = vsyncadd [#allocation4], 4294967040 }
  0x29   :  { %67 = vsyncpa [#allocation3], 1 }
  0x2a   :  { %68 = vsyncpa [#allocation6], 1 }
  0x2b   :  { %69 = vsyncpa [#allocation4], 1 }

</bundles_post_ra>
